<compile_context>
chip_gen: v7x
topology: tpu7x:2x2x1
jax: 0.10.0
libtpu: 0.0.40
codegen_flags: <defaults>
</compile_context>

<pallas_src>
import jax
import jax.numpy as jnp
from jax.experimental import pallas as pl
from jax.experimental.pallas import tpu as pltpu

# ---------------------------- config (small, synthetic) ----------------------
B = 2          # batch
S = 8          # seq
D = 32         # d_model
H = 4          # n_heads
DH = D // H    # head dim
DFF = 4 * D    # mlp hidden


# ------------------------------- fused kernel --------------------------------
def dyt_block_kernel(x_ref, mask_ref, alphas_ref,
                     gamma1_ref, beta1_ref,
                     wqkv_ref, bqkv_ref, wo_ref, bo_ref,
                     gamma2_ref, beta2_ref,
                     w1_ref, b1_ref, w2_ref, b2_ref,
                     o_ref, qkv_scr):
    x = x_ref[...]                                 # (B*S, D) f32
    a1 = alphas_ref[0]                             # DyT alphas from SMEM
    a2 = alphas_ref[1]

    # ---- DyT norm1 (f32) + fused QKV projection (bf16 MXU operands) ---------
    xn = gamma1_ref[...] * jnp.tanh(a1 * x) + beta1_ref[...]
    qkv = jnp.dot(xn.astype(jnp.bfloat16), wqkv_ref[...],
                  preferred_element_type=jnp.float32) + bqkv_ref[...]   # (B*S, 3D)
    # Stage QKV once in VMEM scratch; per-head slices below are ref-level
    # (cheap masked vld), not value-level lane rotates.
    qkv_scr[...] = qkv

    # ---- batch-block-diagonal attention, short static head loop -------------
    # 1/sqrt(DH) is pre-folded into the Q columns of wqkv/bqkv.
    mask = mask_ref[...]                           # (B*S, B*S) extended additive
    y = x + bo_ref[...]                            # residual + out-proj bias
    for h in range(H):                             # static, tiny (4 iters)
        c0 = h * DH
        q_h = qkv_scr[:, 0 * D + c0:0 * D + c0 + DH].astype(jnp.bfloat16)
        k_h = qkv_scr[:, 1 * D + c0:1 * D + c0 + DH].astype(jnp.bfloat16)
        v_h = qkv_scr[:, 2 * D + c0:2 * D + c0 + DH].astype(jnp.bfloat16)
        # scores over ALL rows (cross-batch entries killed by the mask);
        # off-block FLOPs are redundant but free at this size.
        s = jax.lax.dot_general(
            q_h, k_h, (((1,), (1,)), ((), ())),
            preferred_element_type=jnp.float32)                # (B*S, B*S)
        s = s + mask
        s = s - jnp.max(s, axis=-1, keepdims=True)
        p = jnp.exp(s)
        p = p * pl.reciprocal(jnp.sum(p, axis=-1, keepdims=True), approx=True)
        ctx = jnp.dot(p.astype(jnp.bfloat16), v_h,
                      preferred_element_type=jnp.float32)      # (B*S, DH)
        # accumulate output projection per head (no attn scratch round trip);
        # wo is f32 so the DH-row slice stays (8,128)-tile aligned.
        wo_h = wo_ref[c0:c0 + DH, :].astype(jnp.bfloat16)      # (DH, D)
        y = y + jnp.dot(ctx.astype(jnp.bfloat16), wo_h,
                        preferred_element_type=jnp.float32)

    # ---- DyT norm2 + MLP + residual ------------------------------------------
    yn = gamma2_ref[...] * jnp.tanh(a2 * y) + beta2_ref[...]
    hdn = jnp.dot(yn.astype(jnp.bfloat16), w1_ref[...],
                  preferred_element_type=jnp.float32) + b1_ref[...]
    hdn = jax.nn.gelu(hdn, approximate=True)       # tanh-approx GELU (EUP), f32
    o_ref[...] = (y + jnp.dot(hdn.astype(jnp.bfloat16), w2_ref[...],
                              preferred_element_type=jnp.float32)
                  + b2_ref[...]).astype(o_ref.dtype)


# --------------------------- one-time packing helpers -------------------------
def pack_params(p):
    """Pre-pack weights ONCE (not per forward): fuse QKV, fold 1/sqrt(DH) into
    the Q columns, cast the large matmul weights to bf16 (biases / DyT params /
    wo stay f32; wo is row-sliced per head in-kernel so f32 keeps tile-aligned
    slices)."""
    scale = 1.0 / (DH ** 0.5)
    wqkv = jnp.concatenate([p["wq"] * scale, p["wk"], p["wv"]], axis=1)
    bqkv = jnp.concatenate([p["bq"] * scale, p["bk"], p["bv"]], axis=1)
    return {
        "alphas": jnp.concatenate([p["alpha1"].reshape(1),
                                   p["alpha2"].reshape(1)]),           # (2,)
        "gamma1": p["gamma1"], "beta1": p["beta1"],
        "gamma2": p["gamma2"], "beta2": p["beta2"],
        "wqkv": wqkv.astype(jnp.bfloat16), "bqkv": bqkv,
        "wo": p["wo"], "bo": p["bo"],
        "w1": p["w1"].astype(jnp.bfloat16), "b1": p["b1"],
        "w2": p["w2"].astype(jnp.bfloat16), "b2": p["b2"],
    }


def make_extended_mask(mask4d, batch):
    """(1,1,S,S) additive mask -> (B*S, B*S) batch-block-diagonal additive
    mask: original mask on the diagonal blocks, -1e9 everywhere else."""
    s = mask4d.shape[-1]
    m = mask4d.reshape(s, s).astype(jnp.float32)
    sel = jnp.kron(jnp.eye(batch, dtype=jnp.float32),
                   jnp.ones((s, s), jnp.float32)) > 0.5
    return jnp.where(sel, jnp.tile(m, (batch, batch)), jnp.float32(-1e9))


# ------------------------------- wrapper --------------------------------------
def dyt_block_forward(x, mask_ext, pp):
    """Pre-norm DyT transformer block forward (single fused Pallas kernel)."""
    Bx, Sx, Dx = x.shape
    assert Dx == D and Sx == S and Bx == B
    BS = Bx * Sx
    assert mask_ext.shape == (BS, BS)

    x2d = x.reshape(BS, Dx)                        # pure glue

    def full(r, c):
        return pl.BlockSpec((r, c), lambda i: (0, 0))

    smem_spec = pl.BlockSpec(memory_space=pltpu.MemorySpace.SMEM)

    # Advisory cost estimate for the XLA scheduler.
    flops = (2 * BS * Dx * 3 * Dx                          # QKV proj
             + H * (2 * BS * BS * DH) * 2                  # scores + P@V
             + H * 2 * BS * DH * Dx                        # per-head out proj
             + 2 * BS * Dx * DFF + 2 * BS * DFF * Dx)      # MLP
    transcendentals = 2 * BS * Dx + H * BS * BS + BS * DFF
    operands = [x2d, mask_ext, pp["alphas"],
                pp["gamma1"], pp["beta1"], pp["wqkv"], pp["bqkv"],
                pp["wo"], pp["bo"], pp["gamma2"], pp["beta2"],
                pp["w1"], pp["b1"], pp["w2"], pp["b2"]]
    bytes_accessed = sum(int(a.size) * a.dtype.itemsize for a in operands) \
        + BS * Dx * 4                                      # output
    cost = pl.CostEstimate(flops=flops,
                           transcendentals=transcendentals,
                           bytes_accessed=bytes_accessed)

    call = pl.pallas_call(
        dyt_block_kernel,
        out_shape=jax.ShapeDtypeStruct((BS, Dx), x.dtype),
        grid=(1,),
        in_specs=[
            full(BS, Dx),                          # x (flattened)
            full(BS, BS),                          # extended additive mask
            smem_spec,                             # [alpha1, alpha2] scalars
            full(1, Dx), full(1, Dx),              # gamma1, beta1
            full(Dx, 3 * Dx), full(1, 3 * Dx),     # wqkv (bf16), bqkv
            full(Dx, Dx), full(1, Dx),             # wo (f32), bo
            full(1, Dx), full(1, Dx),              # gamma2, beta2
            full(Dx, DFF), full(1, DFF),           # w1 (bf16), b1
            full(DFF, Dx), full(1, Dx),            # w2 (bf16), b2
        ],
        out_specs=full(BS, Dx),
        scratch_shapes=[pltpu.VMEM((BS, 3 * Dx), jnp.float32)],   # QKV staging
        compiler_params=pltpu.CompilerParams(
            dimension_semantics=("arbitrary",)),
        cost_estimate=cost,
    )
    out2d = call(x2d, mask_ext, pp["alphas"],
                 pp["gamma1"], pp["beta1"],
                 pp["wqkv"], pp["bqkv"], pp["wo"], pp["bo"],
                 pp["gamma2"], pp["beta2"],
                 pp["w1"], pp["b1"], pp["w2"], pp["b2"])
    return out2d.reshape(Bx, Sx, Dx)


# --------------------------- pure-JAX reference --------------------------------
def ref_forward(x, mask4d, p):
    def dyt(v, a, g, b):
        return g * jnp.tanh(a * v) + b

    Bx, Sx, Dx = x.shape
    xn = dyt(x, p["alpha1"][0, 0], p["gamma1"], p["beta1"])
    q = xn @ p["wq"] + p["bq"]
    k = xn @ p["wk"] + p["bk"]
    v = xn @ p["wv"] + p["bv"]
    q = q.reshape(Bx, Sx, H, DH).transpose(0, 2, 1, 3)
    k = k.reshape(Bx, Sx, H, DH).transpose(0, 2, 1, 3)
    v = v.reshape(Bx, Sx, H, DH).transpose(0, 2, 1, 3)
    scores = jnp.einsum("bhqd,bhkd->bhqk", q, k) / (DH ** 0.5) + mask4d
    attn = jax.nn.softmax(scores, axis=-1)
    ctx = jnp.einsum("bhqk,bhkd->bhqd", attn, v)
    ctx = ctx.transpose(0, 2, 1, 3).reshape(Bx, Sx, Dx)
    y = x + (ctx @ p["wo"] + p["bo"])

    yn = dyt(y, p["alpha2"][0, 0], p["gamma2"], p["beta2"])
    h = jax.nn.gelu(yn @ p["w1"] + p["b1"], approximate=True)
    return y + (h @ p["w2"] + p["b2"])


# ------------------------------- main ------------------------------------------
def init_params(key):
    ks = jax.random.split(key, 8)
    scale = 0.02
    return {
        # DyT norm1 / norm2: alpha (scalar, init 0.5), gamma=1, beta=0
        "alpha1": jnp.full((1, 1), 0.5, jnp.float32),
        "gamma1": jnp.ones((1, D), jnp.float32),
        "beta1": jnp.zeros((1, D), jnp.float32),
        "alpha2": jnp.full((1, 1), 0.5, jnp.float32),
        "gamma2": jnp.ones((1, D), jnp.float32),
        "beta2": jnp.zeros((1, D), jnp.float32),
        # attention projections
        "wq": scale * jax.random.normal(ks[0], (D, D), jnp.float32),
        "bq": jnp.zeros((1, D), jnp.float32),
        "wk": scale * jax.random.normal(ks[1], (D, D), jnp.float32),
        "bk": jnp.zeros((1, D), jnp.float32),
        "wv": scale * jax.random.normal(ks[2], (D, D), jnp.float32),
        "bv": jnp.zeros((1, D), jnp.float32),
        "wo": scale * jax.random.normal(ks[3], (D, D), jnp.float32),
        "bo": jnp.zeros((1, D), jnp.float32),
        # MLP
        "w1": scale * jax.random.normal(ks[4], (D, DFF), jnp.float32),
        "b1": jnp.zeros((1, DFF), jnp.float32),
        "w2": scale * jax.random.normal(ks[5], (DFF, D), jnp.float32),
        "b2": jnp.zeros((1, D), jnp.float32),
    }


if __name__ == "__main__":
    key = jax.random.PRNGKey(0)
    kx, kp = jax.random.split(key)
    x = jax.random.normal(kx, (B, S, D), jnp.float32)
    # causal additive mask, module convention (1, 1, S, S)
    causal = jnp.tril(jnp.ones((S, S), jnp.bool_))
    mask4d = jnp.where(causal, 0.0, -1e9).astype(jnp.float32)[None, None]
    params = init_params(kp)

    # one-time packing (not part of the per-call path)
    packed = pack_params(params)
    mask_ext = make_extended_mask(mask4d, B)

    out = dyt_block_forward(x, mask_ext, packed)
    out = jax.block_until_ready(out)

    ref = ref_forward(x, mask4d, params)
    assert out.shape == (B, S, D)
    # tolerance accounts for bf16 matmul operands + approx softmax reciprocal
    err = jnp.max(jnp.abs(out - ref))
    assert jnp.allclose(out, ref, atol=2e-2, rtol=2e-2), f"max err {err}"
    print("KERNEL_OK")
</pallas_src>

<mosaic_0001>
module attributes {stable_mosaic.version = 11 : i64} {
  func.func @dyt_block_kernel(%arg0: i32, %arg1: memref<16x32xf32, #tpu.memory_space<vmem>>, %arg2: memref<16x16xf32, #tpu.memory_space<vmem>>, %arg3: memref<2xf32, #tpu.memory_space<smem>>, %arg4: memref<1x32xf32, #tpu.memory_space<vmem>>, %arg5: memref<1x32xf32, #tpu.memory_space<vmem>>, %arg6: memref<32x96xbf16, #tpu.memory_space<vmem>>, %arg7: memref<1x96xf32, #tpu.memory_space<vmem>>, %arg8: memref<32x32xf32, #tpu.memory_space<vmem>>, %arg9: memref<1x32xf32, #tpu.memory_space<vmem>>, %arg10: memref<1x32xf32, #tpu.memory_space<vmem>>, %arg11: memref<1x32xf32, #tpu.memory_space<vmem>>, %arg12: memref<32x128xbf16, #tpu.memory_space<vmem>>, %arg13: memref<1x128xf32, #tpu.memory_space<vmem>>, %arg14: memref<128x32xbf16, #tpu.memory_space<vmem>>, %arg15: memref<1x32xf32, #tpu.memory_space<vmem>>, %arg16: memref<16x32xf32, #tpu.memory_space<vmem>>, %arg17: memref<16x96xf32, #tpu.memory_space<vmem>>) attributes {dimension_semantics = [#tpu.dimension_semantics<arbitrary>], iteration_bounds = array<i64: 1>, scalar_prefetch = 0 : i64, scratch_operands = 1 : i64, tpu.core_type = #tpu.core_type<tc>, window_params = [{pipeline_mode = #tpu.pipeline_mode<synchronous>, transform_indices = @transform_0, window_bounds = array<i64: 16, 32>}, {pipeline_mode = #tpu.pipeline_mode<synchronous>, transform_indices = @transform_1, window_bounds = array<i64: 16, 16>}, {transform_indices = @transform_2, window_bounds = array<i64: 2>}, {pipeline_mode = #tpu.pipeline_mode<synchronous>, transform_indices = @transform_3, window_bounds = array<i64: 1, 32>}, {pipeline_mode = #tpu.pipeline_mode<synchronous>, transform_indices = @transform_4, window_bounds = array<i64: 1, 32>}, {pipeline_mode = #tpu.pipeline_mode<synchronous>, transform_indices = @transform_5, window_bounds = array<i64: 32, 96>}, {pipeline_mode = #tpu.pipeline_mode<synchronous>, transform_indices = @transform_6, window_bounds = array<i64: 1, 96>}, {pipeline_mode = #tpu.pipeline_mode<synchronous>, transform_indices = @transform_7, window_bounds = array<i64: 32, 32>}, {pipeline_mode = #tpu.pipeline_mode<synchronous>, transform_indices = @transform_8, window_bounds = array<i64: 1, 32>}, {pipeline_mode = #tpu.pipeline_mode<synchronous>, transform_indices = @transform_9, window_bounds = array<i64: 1, 32>}, {pipeline_mode = #tpu.pipeline_mode<synchronous>, transform_indices = @transform_10, window_bounds = array<i64: 1, 32>}, {pipeline_mode = #tpu.pipeline_mode<synchronous>, transform_indices = @transform_11, window_bounds = array<i64: 32, 128>}, {pipeline_mode = #tpu.pipeline_mode<synchronous>, transform_indices = @transform_12, window_bounds = array<i64: 1, 128>}, {pipeline_mode = #tpu.pipeline_mode<synchronous>, transform_indices = @transform_13, window_bounds = array<i64: 128, 32>}, {pipeline_mode = #tpu.pipeline_mode<synchronous>, transform_indices = @transform_14, window_bounds = array<i64: 1, 32>}, {pipeline_mode = #tpu.pipeline_mode<synchronous>, transform_indices = @transform_15, window_bounds = array<i64: 16, 32>}]} {
    %c0 = arith.constant 0 : index
    %c0_0 = arith.constant 0 : index
    %0 = vector.load %arg1[%c0, %c0_0] : memref<16x32xf32, #tpu.memory_space<vmem>>, vector<16x32xf32>
    %c0_1 = arith.constant 0 : index
    %1 = memref.load %arg3[%c0_1] : memref<2xf32, #tpu.memory_space<smem>>
    %c1 = arith.constant 1 : index
    %2 = memref.load %arg3[%c1] : memref<2xf32, #tpu.memory_space<smem>>
    %c0_2 = arith.constant 0 : index
    %c0_3 = arith.constant 0 : index
    %3 = vector.load %arg4[%c0_2, %c0_3] : memref<1x32xf32, #tpu.memory_space<vmem>>, vector<1x32xf32>
    %4 = vector.broadcast %1 : f32 to vector<16x32xf32>
    %5 = arith.mulf %4, %0 : vector<16x32xf32>
    %6 = math.tanh %5 : vector<16x32xf32>
    %7 = vector.broadcast %3 : vector<1x32xf32> to vector<16x32xf32>
    %8 = arith.mulf %7, %6 : vector<16x32xf32>
    %c0_4 = arith.constant 0 : index
    %c0_5 = arith.constant 0 : index
    %9 = vector.load %arg5[%c0_4, %c0_5] : memref<1x32xf32, #tpu.memory_space<vmem>>, vector<1x32xf32>
    %10 = vector.broadcast %9 : vector<1x32xf32> to vector<16x32xf32>
    %11 = arith.addf %8, %10 : vector<16x32xf32>
    %12 = arith.truncf %11 : vector<16x32xf32> to vector<16x32xbf16>
    %c0_6 = arith.constant 0 : index
    %c0_7 = arith.constant 0 : index
    %13 = vector.load %arg6[%c0_6, %c0_7] : memref<32x96xbf16, #tpu.memory_space<vmem>>, vector<32x96xbf16>
    %cst = arith.constant dense<0.000000e+00> : vector<16x96xf32>
    %14 = tpu.matmul %12, %13, %cst {dimension_numbers = #tpu.dot_dimension_numbers<[1], [0], [0], [1], [0, 0, 1, 1], [], []>} : vector<16x32xbf16>, vector<32x96xbf16>, vector<16x96xf32> -> vector<16x96xf32>
    %c0_8 = arith.constant 0 : index
    %c0_9 = arith.constant 0 : index
    %15 = vector.load %arg7[%c0_8, %c0_9] : memref<1x96xf32, #tpu.memory_space<vmem>>, vector<1x96xf32>
    %16 = vector.broadcast %15 : vector<1x96xf32> to vector<16x96xf32>
    %17 = arith.addf %14, %16 : vector<16x96xf32>
    %c0_10 = arith.constant 0 : index
    %c0_11 = arith.constant 0 : index
    %18 = vector.load %arg17[%c0_10, %c0_11] : memref<16x96xf32, #tpu.memory_space<vmem>>, vector<16x96xf32>
    tpu.vector_store %arg17[%c0_10, %c0_11], %17 {strides = array<i32>} : memref<16x96xf32, #tpu.memory_space<vmem>>, vector<16x96xf32>,
    %c0_12 = arith.constant 0 : index
    %c0_13 = arith.constant 0 : index
    %19 = vector.load %arg2[%c0_12, %c0_13] : memref<16x16xf32, #tpu.memory_space<vmem>>, vector<16x16xf32>
    %c0_14 = arith.constant 0 : index
    %c0_15 = arith.constant 0 : index
    %20 = vector.load %arg9[%c0_14, %c0_15] : memref<1x32xf32, #tpu.memory_space<vmem>>, vector<1x32xf32>
    %21 = vector.broadcast %20 : vector<1x32xf32> to vector<16x32xf32>
    %22 = arith.addf %0, %21 : vector<16x32xf32>
    %c0_16 = arith.constant 0 : index
    %c0_17 = arith.constant 0 : index
    %23 = vector.load %arg17[%c0_16, %c0_17] : memref<16x96xf32, #tpu.memory_space<vmem>>, vector<16x8xf32>
    %24 = arith.truncf %23 : vector<16x8xf32> to vector<16x8xbf16>
    %c0_18 = arith.constant 0 : index
    %c32 = arith.constant 32 : index
    %25 = vector.load %arg17[%c0_18, %c32] : memref<16x96xf32, #tpu.memory_space<vmem>>, vector<16x8xf32>
    %26 = arith.truncf %25 : vector<16x8xf32> to vector<16x8xbf16>
    %c0_19 = arith.constant 0 : index
    %c64 = arith.constant 64 : index
    %27 = vector.load %arg17[%c0_19, %c64] : memref<16x96xf32, #tpu.memory_space<vmem>>, vector<16x8xf32>
    %28 = arith.truncf %27 : vector<16x8xf32> to vector<16x8xbf16>
    %cst_20 = arith.constant dense<0.000000e+00> : vector<16x16xf32>
    %29 = tpu.matmul %24, %26, %cst_20 {dimension_numbers = #tpu.dot_dimension_numbers<[1], [1], [0], [0], [0, 0, 1, 0], [], []>} : vector<16x8xbf16>, vector<16x8xbf16>, vector<16x16xf32> -> vector<16x16xf32>
    %30 = arith.addf %29, %19 : vector<16x16xf32>
    %cst_21 = arith.constant dense<0xFF800000> : vector<16xf32>
    %31 = vector.multi_reduction <maximumf>, %30, %cst_21 [1] : vector<16x16xf32> to vector<16xf32>
    %32 = vector.shape_cast %31 : vector<16xf32> to vector<16x1xf32>
    %33 = vector.broadcast %32 : vector<16x1xf32> to vector<16x16xf32>
    %34 = arith.subf %30, %33 : vector<16x16xf32>
    %35 = math.exp %34 : vector<16x16xf32>
    %cst_22 = arith.constant dense<0.000000e+00> : vector<16xf32>
    %36 = vector.multi_reduction <add>, %35, %cst_22 [1] : vector<16x16xf32> to vector<16xf32>
    %37 = vector.shape_cast %36 : vector<16xf32> to vector<16x1xf32>
    %38 = tpu.reciprocal %37 {approx = true} : vector<16x1xf32> -> vector<16x1xf32>
    %39 = vector.broadcast %38 : vector<16x1xf32> to vector<16x16xf32>
    %40 = arith.mulf %35, %39 : vector<16x16xf32>
    %41 = arith.truncf %40 : vector<16x16xf32> to vector<16x16xbf16>
    %cst_23 = arith.constant dense<0.000000e+00> : vector<16x8xf32>
    %42 = tpu.matmul %41, %28, %cst_23 {dimension_numbers = #tpu.dot_dimension_numbers<[1], [0], [0], [1], [0, 0, 1, 1], [], []>} : vector<16x16xbf16>, vector<16x8xbf16>, vector<16x8xf32> -> vector<16x8xf32>
    %c0_24 = arith.constant 0 : index
    %c0_25 = arith.constant 0 : index
    %43 = vector.load %arg8[%c0_24, %c0_25] : memref<32x32xf32, #tpu.memory_space<vmem>>, vector<8x32xf32>
    %44 = arith.truncf %43 : vector<8x32xf32> to vector<8x32xbf16>
    %45 = arith.truncf %42 : vector<16x8xf32> to vector<16x8xbf16>
    %cst_26 = arith.constant dense<0.000000e+00> : vector<16x32xf32>
    %46 = tpu.matmul %45, %44, %cst_26 {dimension_numbers = #tpu.dot_dimension_numbers<[1], [0], [0], [1], [0, 0, 1, 1], [], []>} : vector<16x8xbf16>, vector<8x32xbf16>, vector<16x32xf32> -> vector<16x32xf32>
    %47 = arith.addf %22, %46 : vector<16x32xf32>
    %c0_27 = arith.constant 0 : index
    %c8 = arith.constant 8 : index
    %48 = vector.load %arg17[%c0_27, %c8] : memref<16x96xf32, #tpu.memory_space<vmem>>, vector<16x8xf32>
    %49 = arith.truncf %48 : vector<16x8xf32> to vector<16x8xbf16>
    %c0_28 = arith.constant 0 : index
    %c40 = arith.constant 40 : index
    %50 = vector.load %arg17[%c0_28, %c40] : memref<16x96xf32, #tpu.memory_space<vmem>>, vector<16x8xf32>
    %51 = arith.truncf %50 : vector<16x8xf32> to vector<16x8xbf16>
    %c0_29 = arith.constant 0 : index
    %c72 = arith.constant 72 : index
    %52 = vector.load %arg17[%c0_29, %c72] : memref<16x96xf32, #tpu.memory_space<vmem>>, vector<16x8xf32>
    %53 = arith.truncf %52 : vector<16x8xf32> to vector<16x8xbf16>
    %cst_30 = arith.constant dense<0.000000e+00> : vector<16x16xf32>
    %54 = tpu.matmul %49, %51, %cst_30 {dimension_numbers = #tpu.dot_dimension_numbers<[1], [1], [0], [0], [0, 0, 1, 0], [], []>} : vector<16x8xbf16>, vector<16x8xbf16>, vector<16x16xf32> -> vector<16x16xf32>
    %55 = arith.addf %54, %19 : vector<16x16xf32>
    %cst_31 = arith.constant dense<0xFF800000> : vector<16xf32>
    %56 = vector.multi_reduction <maximumf>, %55, %cst_31 [1] : vector<16x16xf32> to vector<16xf32>
    %57 = vector.shape_cast %56 : vector<16xf32> to vector<16x1xf32>
    %58 = vector.broadcast %57 : vector<16x1xf32> to vector<16x16xf32>
    %59 = arith.subf %55, %58 : vector<16x16xf32>
    %60 = math.exp %59 : vector<16x16xf32>
    %cst_32 = arith.constant dense<0.000000e+00> : vector<16xf32>
    %61 = vector.multi_reduction <add>, %60, %cst_32 [1] : vector<16x16xf32> to vector<16xf32>
    %62 = vector.shape_cast %61 : vector<16xf32> to vector<16x1xf32>
    %63 = tpu.reciprocal %62 {approx = true} : vector<16x1xf32> -> vector<16x1xf32>
    %64 = vector.broadcast %63 : vector<16x1xf32> to vector<16x16xf32>
    %65 = arith.mulf %60, %64 : vector<16x16xf32>
    %66 = arith.truncf %65 : vector<16x16xf32> to vector<16x16xbf16>
    %cst_33 = arith.constant dense<0.000000e+00> : vector<16x8xf32>
    %67 = tpu.matmul %66, %53, %cst_33 {dimension_numbers = #tpu.dot_dimension_numbers<[1], [0], [0], [1], [0, 0, 1, 1], [], []>} : vector<16x16xbf16>, vector<16x8xbf16>, vector<16x8xf32> -> vector<16x8xf32>
    %c8_34 = arith.constant 8 : index
    %c0_35 = arith.constant 0 : index
    %68 = vector.load %arg8[%c8_34, %c0_35] : memref<32x32xf32, #tpu.memory_space<vmem>>, vector<8x32xf32>
    %69 = arith.truncf %68 : vector<8x32xf32> to vector<8x32xbf16>
    %70 = arith.truncf %67 : vector<16x8xf32> to vector<16x8xbf16>
    %cst_36 = arith.constant dense<0.000000e+00> : vector<16x32xf32>
    %71 = tpu.matmul %70, %69, %cst_36 {dimension_numbers = #tpu.dot_dimension_numbers<[1], [0], [0], [1], [0, 0, 1, 1], [], []>} : vector<16x8xbf16>, vector<8x32xbf16>, vector<16x32xf32> -> vector<16x32xf32>
    %72 = arith.addf %47, %71 : vector<16x32xf32>
    %c0_37 = arith.constant 0 : index
    %c16 = arith.constant 16 : index
    %73 = vector.load %arg17[%c0_37, %c16] : memref<16x96xf32, #tpu.memory_space<vmem>>, vector<16x8xf32>
    %74 = arith.truncf %73 : vector<16x8xf32> to vector<16x8xbf16>
    %c0_38 = arith.constant 0 : index
    %c48 = arith.constant 48 : index
    %75 = vector.load %arg17[%c0_38, %c48] : memref<16x96xf32, #tpu.memory_space<vmem>>, vector<16x8xf32>
    %76 = arith.truncf %75 : vector<16x8xf32> to vector<16x8xbf16>
    %c0_39 = arith.constant 0 : index
    %c80 = arith.constant 80 : index
    %77 = vector.load %arg17[%c0_39, %c80] : memref<16x96xf32, #tpu.memory_space<vmem>>, vector<16x8xf32>
    %78 = arith.truncf %77 : vector<16x8xf32> to vector<16x8xbf16>
    %cst_40 = arith.constant dense<0.000000e+00> : vector<16x16xf32>
    %79 = tpu.matmul %74, %76, %cst_40 {dimension_numbers = #tpu.dot_dimension_numbers<[1], [1], [0], [0], [0, 0, 1, 0], [], []>} : vector<16x8xbf16>, vector<16x8xbf16>, vector<16x16xf32> -> vector<16x16xf32>
    %80 = arith.addf %79, %19 : vector<16x16xf32>
    %cst_41 = arith.constant dense<0xFF800000> : vector<16xf32>
    %81 = vector.multi_reduction <maximumf>, %80, %cst_41 [1] : vector<16x16xf32> to vector<16xf32>
    %82 = vector.shape_cast %81 : vector<16xf32> to vector<16x1xf32>
    %83 = vector.broadcast %82 : vector<16x1xf32> to vector<16x16xf32>
    %84 = arith.subf %80, %83 : vector<16x16xf32>
    %85 = math.exp %84 : vector<16x16xf32>
    %cst_42 = arith.constant dense<0.000000e+00> : vector<16xf32>
    %86 = vector.multi_reduction <add>, %85, %cst_42 [1] : vector<16x16xf32> to vector<16xf32>
    %87 = vector.shape_cast %86 : vector<16xf32> to vector<16x1xf32>
    %88 = tpu.reciprocal %87 {approx = true} : vector<16x1xf32> -> vector<16x1xf32>
    %89 = vector.broadcast %88 : vector<16x1xf32> to vector<16x16xf32>
    %90 = arith.mulf %85, %89 : vector<16x16xf32>
    %91 = arith.truncf %90 : vector<16x16xf32> to vector<16x16xbf16>
    %cst_43 = arith.constant dense<0.000000e+00> : vector<16x8xf32>
    %92 = tpu.matmul %91, %78, %cst_43 {dimension_numbers = #tpu.dot_dimension_numbers<[1], [0], [0], [1], [0, 0, 1, 1], [], []>} : vector<16x16xbf16>, vector<16x8xbf16>, vector<16x8xf32> -> vector<16x8xf32>
    %c16_44 = arith.constant 16 : index
    %c0_45 = arith.constant 0 : index
    %93 = vector.load %arg8[%c16_44, %c0_45] : memref<32x32xf32, #tpu.memory_space<vmem>>, vector<8x32xf32>
    %94 = arith.truncf %93 : vector<8x32xf32> to vector<8x32xbf16>
    %95 = arith.truncf %92 : vector<16x8xf32> to vector<16x8xbf16>
    %cst_46 = arith.constant dense<0.000000e+00> : vector<16x32xf32>
    %96 = tpu.matmul %95, %94, %cst_46 {dimension_numbers = #tpu.dot_dimension_numbers<[1], [0], [0], [1], [0, 0, 1, 1], [], []>} : vector<16x8xbf16>, vector<8x32xbf16>, vector<16x32xf32> -> vector<16x32xf32>
    %97 = arith.addf %72, %96 : vector<16x32xf32>
    %c0_47 = arith.constant 0 : index
    %c24 = arith.constant 24 : index
    %98 = vector.load %arg17[%c0_47, %c24] : memref<16x96xf32, #tpu.memory_space<vmem>>, vector<16x8xf32>
    %99 = arith.truncf %98 : vector<16x8xf32> to vector<16x8xbf16>
    %c0_48 = arith.constant 0 : index
    %c56 = arith.constant 56 : index
    %100 = vector.load %arg17[%c0_48, %c56] : memref<16x96xf32, #tpu.memory_space<vmem>>, vector<16x8xf32>
    %101 = arith.truncf %100 : vector<16x8xf32> to vector<16x8xbf16>
    %c0_49 = arith.constant 0 : index
    %c88 = arith.constant 88 : index
    %102 = vector.load %arg17[%c0_49, %c88] : memref<16x96xf32, #tpu.memory_space<vmem>>, vector<16x8xf32>
    %103 = arith.truncf %102 : vector<16x8xf32> to vector<16x8xbf16>
    %cst_50 = arith.constant dense<0.000000e+00> : vector<16x16xf32>
    %104 = tpu.matmul %99, %101, %cst_50 {dimension_numbers = #tpu.dot_dimension_numbers<[1], [1], [0], [0], [0, 0, 1, 0], [], []>} : vector<16x8xbf16>, vector<16x8xbf16>, vector<16x16xf32> -> vector<16x16xf32>
    %105 = arith.addf %104, %19 : vector<16x16xf32>
    %cst_51 = arith.constant dense<0xFF800000> : vector<16xf32>
    %106 = vector.multi_reduction <maximumf>, %105, %cst_51 [1] : vector<16x16xf32> to vector<16xf32>
    %107 = vector.shape_cast %106 : vector<16xf32> to vector<16x1xf32>
    %108 = vector.broadcast %107 : vector<16x1xf32> to vector<16x16xf32>
    %109 = arith.subf %105, %108 : vector<16x16xf32>
    %110 = math.exp %109 : vector<16x16xf32>
    %cst_52 = arith.constant dense<0.000000e+00> : vector<16xf32>
    %111 = vector.multi_reduction <add>, %110, %cst_52 [1] : vector<16x16xf32> to vector<16xf32>
    %112 = vector.shape_cast %111 : vector<16xf32> to vector<16x1xf32>
    %113 = tpu.reciprocal %112 {approx = true} : vector<16x1xf32> -> vector<16x1xf32>
    %114 = vector.broadcast %113 : vector<16x1xf32> to vector<16x16xf32>
    %115 = arith.mulf %110, %114 : vector<16x16xf32>
    %116 = arith.truncf %115 : vector<16x16xf32> to vector<16x16xbf16>
    %cst_53 = arith.constant dense<0.000000e+00> : vector<16x8xf32>
    %117 = tpu.matmul %116, %103, %cst_53 {dimension_numbers = #tpu.dot_dimension_numbers<[1], [0], [0], [1], [0, 0, 1, 1], [], []>} : vector<16x16xbf16>, vector<16x8xbf16>, vector<16x8xf32> -> vector<16x8xf32>
    %c24_54 = arith.constant 24 : index
    %c0_55 = arith.constant 0 : index
    %118 = vector.load %arg8[%c24_54, %c0_55] : memref<32x32xf32, #tpu.memory_space<vmem>>, vector<8x32xf32>
    %119 = arith.truncf %118 : vector<8x32xf32> to vector<8x32xbf16>
    %120 = arith.truncf %117 : vector<16x8xf32> to vector<16x8xbf16>
    %cst_56 = arith.constant dense<0.000000e+00> : vector<16x32xf32>
    %121 = tpu.matmul %120, %119, %cst_56 {dimension_numbers = #tpu.dot_dimension_numbers<[1], [0], [0], [1], [0, 0, 1, 1], [], []>} : vector<16x8xbf16>, vector<8x32xbf16>, vector<16x32xf32> -> vector<16x32xf32>
    %122 = arith.addf %97, %121 : vector<16x32xf32>
    %c0_57 = arith.constant 0 : index
    %c0_58 = arith.constant 0 : index
    %123 = vector.load %arg10[%c0_57, %c0_58] : memref<1x32xf32, #tpu.memory_space<vmem>>, vector<1x32xf32>
    %124 = vector.broadcast %2 : f32 to vector<16x32xf32>
    %125 = arith.mulf %124, %122 : vector<16x32xf32>
    %126 = math.tanh %125 : vector<16x32xf32>
    %127 = vector.broadcast %123 : vector<1x32xf32> to vector<16x32xf32>
    %128 = arith.mulf %127, %126 : vector<16x32xf32>
    %c0_59 = arith.constant 0 : index
    %c0_60 = arith.constant 0 : index
    %129 = vector.load %arg11[%c0_59, %c0_60] : memref<1x32xf32, #tpu.memory_space<vmem>>, vector<1x32xf32>
    %130 = vector.broadcast %129 : vector<1x32xf32> to vector<16x32xf32>
    %131 = arith.addf %128, %130 : vector<16x32xf32>
    %132 = arith.truncf %131 : vector<16x32xf32> to vector<16x32xbf16>
    %c0_61 = arith.constant 0 : index
    %c0_62 = arith.constant 0 : index
    %133 = vector.load %arg12[%c0_61, %c0_62] : memref<32x128xbf16, #tpu.memory_space<vmem>>, vector<32x128xbf16>
    %cst_63 = arith.constant dense<0.000000e+00> : vector<16x128xf32>
    %134 = tpu.matmul %132, %133, %cst_63 {dimension_numbers = #tpu.dot_dimension_numbers<[1], [0], [0], [1], [0, 0, 1, 1], [], []>} : vector<16x32xbf16>, vector<32x128xbf16>, vector<16x128xf32> -> vector<16x128xf32>
    %c0_64 = arith.constant 0 : index
    %c0_65 = arith.constant 0 : index
    %135 = vector.load %arg13[%c0_64, %c0_65] : memref<1x128xf32, #tpu.memory_space<vmem>>, vector<1x128xf32>
    %136 = vector.broadcast %135 : vector<1x128xf32> to vector<16x128xf32>
    %137 = arith.addf %134, %136 : vector<16x128xf32>
    %138 = arith.mulf %137, %137 : vector<16x128xf32>
    %139 = arith.mulf %137, %138 : vector<16x128xf32>
    %cst_66 = arith.constant 4.471500e-02 : f32
    %140 = vector.broadcast %cst_66 : f32 to vector<16x128xf32>
    %141 = arith.mulf %140, %139 : vector<16x128xf32>
    %142 = arith.addf %137, %141 : vector<16x128xf32>
    %cst_67 = arith.constant 0.797884583 : f32
    %143 = vector.broadcast %cst_67 : f32 to vector<16x128xf32>
    %144 = arith.mulf %143, %142 : vector<16x128xf32>
    %145 = math.tanh %144 : vector<16x128xf32>
    %cst_68 = arith.constant 1.000000e+00 : f32
    %146 = vector.broadcast %cst_68 : f32 to vector<16x128xf32>
    %147 = arith.addf %146, %145 : vector<16x128xf32>
    %cst_69 = arith.constant 5.000000e-01 : f32
    %148 = vector.broadcast %cst_69 : f32 to vector<16x128xf32>
    %149 = arith.mulf %148, %147 : vector<16x128xf32>
    %150 = arith.mulf %137, %149 : vector<16x128xf32>
    %151 = arith.truncf %150 : vector<16x128xf32> to vector<16x128xbf16>
    %c0_70 = arith.constant 0 : index
    %c0_71 = arith.constant 0 : index
    %152 = vector.load %arg14[%c0_70, %c0_71] : memref<128x32xbf16, #tpu.memory_space<vmem>>, vector<128x32xbf16>
    %cst_72 = arith.constant dense<0.000000e+00> : vector<16x32xf32>
    %153 = tpu.matmul %151, %152, %cst_72 {dimension_numbers = #tpu.dot_dimension_numbers<[1], [0], [0], [1], [0, 0, 1, 1], [], []>} : vector<16x128xbf16>, vector<128x32xbf16>, vector<16x32xf32> -> vector<16x32xf32>
    %154 = arith.addf %122, %153 : vector<16x32xf32>
    %c0_73 = arith.constant 0 : index
    %c0_74 = arith.constant 0 : index
    %155 = vector.load %arg15[%c0_73, %c0_74] : memref<1x32xf32, #tpu.memory_space<vmem>>, vector<1x32xf32>
    %156 = vector.broadcast %155 : vector<1x32xf32> to vector<16x32xf32>
    %157 = arith.addf %154, %156 : vector<16x32xf32>
    %c0_75 = arith.constant 0 : index
    %c0_76 = arith.constant 0 : index
    %158 = vector.load %arg16[%c0_75, %c0_76] : memref<16x32xf32, #tpu.memory_space<vmem>>, vector<16x32xf32>
    tpu.vector_store %arg16[%c0_75, %c0_76], %157 {strides = array<i32>} : memref<16x32xf32, #tpu.memory_space<vmem>>, vector<16x32xf32>,
    return
  }
  func.func @transform_0(%arg0: i32) -> (i32, i32) {
    %c0_i32 = arith.constant 0 : i32
    %c0_i32_0 = arith.constant 0 : i32
    %c0_i32_1 = arith.constant 0 : i32
    return %c0_i32, %c0_i32_0 : i32, i32
  }
  func.func @transform_1(%arg0: i32) -> (i32, i32) {
    %c0_i32 = arith.constant 0 : i32
    %c0_i32_0 = arith.constant 0 : i32
    %c0_i32_1 = arith.constant 0 : i32
    return %c0_i32, %c0_i32_0 : i32, i32
  }
  func.func @transform_2(%arg0: i32) -> i32 {
    %c0_i32 = arith.constant 0 : i32
    %c0_i32_0 = arith.constant 0 : i32
    return %c0_i32 : i32
  }
  func.func @transform_3(%arg0: i32) -> (i32, i32) {
    %c0_i32 = arith.constant 0 : i32
    %c0_i32_0 = arith.constant 0 : i32
    %c0_i32_1 = arith.constant 0 : i32
    return %c0_i32, %c0_i32_0 : i32, i32
  }
  func.func @transform_4(%arg0: i32) -> (i32, i32) {
    %c0_i32 = arith.constant 0 : i32
    %c0_i32_0 = arith.constant 0 : i32
    %c0_i32_1 = arith.constant 0 : i32
    return %c0_i32, %c0_i32_0 : i32, i32
  }
  func.func @transform_5(%arg0: i32) -> (i32, i32) {
    %c0_i32 = arith.constant 0 : i32
    %c0_i32_0 = arith.constant 0 : i32
    %c0_i32_1 = arith.constant 0 : i32
    return %c0_i32, %c0_i32_0 : i32, i32
  }
  func.func @transform_6(%arg0: i32) -> (i32, i32) {
    %c0_i32 = arith.constant 0 : i32
    %c0_i32_0 = arith.constant 0 : i32
    %c0_i32_1 = arith.constant 0 : i32
    return %c0_i32, %c0_i32_0 : i32, i32
  }
  func.func @transform_7(%arg0: i32) -> (i32, i32) {
    %c0_i32 = arith.constant 0 : i32
    %c0_i32_0 = arith.constant 0 : i32
    %c0_i32_1 = arith.constant 0 : i32
    return %c0_i32, %c0_i32_0 : i32, i32
  }
  func.func @transform_8(%arg0: i32) -> (i32, i32) {
    %c0_i32 = arith.constant 0 : i32
    %c0_i32_0 = arith.constant 0 : i32
    %c0_i32_1 = arith.constant 0 : i32
    return %c0_i32, %c0_i32_0 : i32, i32
  }
  func.func @transform_9(%arg0: i32) -> (i32, i32) {
    %c0_i32 = arith.constant 0 : i32
    %c0_i32_0 = arith.constant 0 : i32
    %c0_i32_1 = arith.constant 0 : i32
    return %c0_i32, %c0_i32_0 : i32, i32
  }
  func.func @transform_10(%arg0: i32) -> (i32, i32) {
    %c0_i32 = arith.constant 0 : i32
    %c0_i32_0 = arith.constant 0 : i32
    %c0_i32_1 = arith.constant 0 : i32
    return %c0_i32, %c0_i32_0 : i32, i32
  }
  func.func @transform_11(%arg0: i32) -> (i32, i32) {
    %c0_i32 = arith.constant 0 : i32
    %c0_i32_0 = arith.constant 0 : i32
    %c0_i32_1 = arith.constant 0 : i32
    return %c0_i32, %c0_i32_0 : i32, i32
  }
  func.func @transform_12(%arg0: i32) -> (i32, i32) {
    %c0_i32 = arith.constant 0 : i32
    %c0_i32_0 = arith.constant 0 : i32
    %c0_i32_1 = arith.constant 0 : i32
    return %c0_i32, %c0_i32_0 : i32, i32
  }
  func.func @transform_13(%arg0: i32) -> (i32, i32) {
    %c0_i32 = arith.constant 0 : i32
    %c0_i32_0 = arith.constant 0 : i32
    %c0_i32_1 = arith.constant 0 : i32
    return %c0_i32, %c0_i32_0 : i32, i32
  }
  func.func @transform_14(%arg0: i32) -> (i32, i32) {
    %c0_i32 = arith.constant 0 : i32
    %c0_i32_0 = arith.constant 0 : i32
    %c0_i32_1 = arith.constant 0 : i32
    return %c0_i32, %c0_i32_0 : i32, i32
  }
  func.func @transform_15(%arg0: i32) -> (i32, i32) {
    %c0_i32 = arith.constant 0 : i32
    %c0_i32_0 = arith.constant 0 : i32
    %c0_i32_1 = arith.constant 0 : i32
    return %c0_i32, %c0_i32_0 : i32, i32
  }
}

</mosaic_0001>

<bundles_post_ra>
// kernel: tpu_custom_call.1
= control target key start
LH: loop header
LB: loop body
LE: loop exit
PB: predicated region body
PF: predicated region fallthrough
CT: control target
= control target key end

     0   :  { %20 = vsyncpa [#allocation6], 0  ;;  %s1944_s0 = inlined_call_operand.vmem [shape: f32[16,32], index: 0, kind: input, shape index: {}]   ;;  %s1945_s1 = inlined_call_operand.vmem [shape: f32[16,16], index: 1, kind: input, shape index: {}]   ;;  %s1946_s2 = inlined_call_operand.vmem [shape: f32[2], index: 2, kind: input, shape index: {}]   ;;  %s1947_s3 = inlined_call_operand.vmem [shape: f32[1,32], index: 3, kind: input, shape index: {}]   ;;  %s1948_s4 = inlined_call_operand.hbm [shape: f32[1,32], index: 4, kind: input, shape index: {}]   ;;  %s1949_s5 = inlined_call_operand.vmem [shape: bf16[32,96], index: 5, kind: input, shape index: {}]   ;;  %s1950_s6 = inlined_call_operand.hbm [shape: f32[1,96], index: 6, kind: input, shape index: {}]   ;;  %s1951_s7 = inlined_call_operand.vmem [shape: f32[32,32], index: 7, kind: input, shape index: {}]   ;;  %s1952_s8 = inlined_call_operand.hbm [shape: f32[1,32], index: 8, kind: input, shape index: {}]   ;;  %s1953_s9 = inlined_call_operand.hbm [shape: f32[1,32], index: 9, kind: input, shape index: {}]   ;;  %s1954_s10 = inlined_call_operand.vmem [shape: f32[1,32], index: 10, kind: input, shape index: {}]   ;;  %s1955_s11 = inlined_call_operand.vmem [shape: bf16[32,128], index: 11, kind: input, shape index: {}]   ;;  %s1956_s12 = inlined_call_operand.vmem [shape: f32[1,128], index: 12, kind: input, shape index: {}]   ;;  %s1957_s13 = inlined_call_operand.vmem [shape: bf16[128,32], index: 13, kind: input, shape index: {}]   ;;  %s1958_s14 = inlined_call_operand.vmem [shape: f32[1,32], index: 14, kind: input, shape index: {}]   ;;  %s1959_s15 = inlined_call_operand.hbm [shape: f32[16,32], index: 15, kind: output, shape index: {}]  }
   0x1   :  { %21 = vsyncpa [#allocation4], 0 }
   0x2   :  { %22 = vsyncpa [#allocation9], 0 }
   0x3   :  { %23 = vsyncpa [#allocation12], 0 }
   0x4   :  { %24 = vsyncpa [#allocation5], 0  ;;  %s35_s20 = sshll.u32 %s1946_s2, 4  ;;  %s1572_s21 = smov [#allocation8]   ;;  %s36_s20 = int_to_ptr.vmem [resolvable:$true] %s35_s20 }
   0x5   :  { %s59_s22 = sshll.u32 %s1572_s21, 4  ;;  %s1440_s25 = scalar_lea.hbm %s1950_s6, 16  ;;  %s60_s22 = int_to_ptr.vmem [resolvable:$true] %s59_s22 }
   0x6   :  { %p1441_p0 = scmp.ne.s32.totalorder %s1950_s6, %s1440_s25  ;;  %p1444_p1 = scmp.lt.u32.totalorder %s1440_s25, %s1950_s6 }
   0x8   :  { %p1446_p2 = pnand %p1444_p1, %p1441_p0 }
   0xa   :  { %1449 = shalt.err (!%p1446_p2)
}
   0xb   :  { %s1450_s30 = scalar_lea.vmem %s60_s22, 16  ;;  %s1454_s2 = scalar_lea.vmem %s60_s22, 32 }
   0xc   :  { %p1451_p3 = scmp.ne.s32.totalorder %s60_s22, %s1450_s30  ;;  %p1455_p4 = scmp.lt.s32.totalorder %s60_s22, %s60_s22 }
   0xd   :  { %p1456_p5 = scmp.lt.s32.totalorder %s1454_s2, %s1450_s30 }
   0xf   :  { %p1457_p6 = por %p1456_p5, %p1455_p4 }
  0x11   :  { %p1458_p7 = pnand %p1457_p6, %p1451_p3 }
  0x13   :  { %1461 = shalt.err (!%p1458_p7)
}
  0x14   :  { %62 = dma.hbm_to_vmem [thread:$0]  %s1950_s6, 16, %s60_s22, [#allocation9]  }
  0x15   :  { %s1462_s18 = scalar_lea.vmem %s36_s20, 16  ;;  %p1467_p9 = scmp.lt.s32.totalorder %s36_s20, %s36_s20 }
  0x16   :  { %p1463_p8 = scmp.ne.s32.totalorder %s36_s20, %s1462_s18  ;;  %p1468_p10 = scmp.lt.s32.totalorder %s1462_s18, %s1462_s18 }
  0x18   :  { %p1469_p11 = por %p1468_p10, %p1467_p9 }
  0x1a   :  { %p1470_p12 = pnand %p1469_p11, %p1463_p8 }
  0x1c   :  { %1473 = shalt.err (!%p1470_p12)
}
  0x1d   :  { %s1573_s19 = smov [#allocation3]   ;;  %s1574_s21 = smov [#allocation7]  }
  0x1e   :  { %38 = dma.vmem_to_smem %s36_s20, 16, %s1573_s19, [#allocation6]  }
  0x1f   :  { %s47_s23 = sshll.u32 %s1574_s21, 4  ;;  %s1575_s24 = smov [#allocation10]   ;;  %s48_s23 = int_to_ptr.vmem [resolvable:$true] %s47_s23 }
  0x20   :  { %s71_s25 = sshll.u32 %s1575_s24, 4  ;;  %s1474_s28 = scalar_lea.hbm %s1948_s4, 16  ;;  %s72_s25 = int_to_ptr.vmem [resolvable:$true] %s71_s25 }
  0x21   :  { %p1475_p13 = scmp.ne.s32.totalorder %s1948_s4, %s1474_s28  ;;  %p1478_p0 = scmp.lt.u32.totalorder %s1474_s28, %s1948_s4 }
  0x23   :  { %p1480_p1 = pnand %p1478_p0, %p1475_p13 }
  0x25   :  { %1483 = shalt.err (!%p1480_p1)
}
  0x26   :  { %s1484_s20 = scalar_lea.vmem %s48_s23, 16  ;;  %s1488_s2 = scalar_lea.vmem %s48_s23, 32 }
  0x27   :  { %p1485_p2 = scmp.ne.s32.totalorder %s48_s23, %s1484_s20  ;;  %p1489_p3 = scmp.lt.s32.totalorder %s48_s23, %s48_s23 }
  0x28   :  { %p1490_p4 = scmp.lt.s32.totalorder %s1488_s2, %s1484_s20 }
  0x2a   :  { %p1491_p5 = por %p1490_p4, %p1489_p3 }
  0x2c   :  { %p1492_p6 = pnand %p1491_p5, %p1485_p2 }
  0x2e   :  { %1495 = shalt.err (!%p1492_p6)
}
  0x2f   :  { %50 = dma.hbm_to_vmem [thread:$0]  %s1948_s4, 16, %s48_s23, [#allocation4]  }
  0x30   :  { %s1496_s21 = scalar_lea.hbm %s1952_s8, 16 }
  0x31   :  { %p1497_p7 = scmp.ne.s32.totalorder %s1952_s8, %s1496_s21  ;;  %p1500_p8 = scmp.lt.u32.totalorder %s1496_s21, %s1952_s8 }
  0x33   :  { %p1502_p9 = pnand %p1500_p8, %p1497_p7 }
  0x35   :  { %1505 = shalt.err (!%p1502_p9)
}
  0x36   :  { %s1506_s6 = scalar_lea.vmem %s72_s25, 16  ;;  %s1510_s22 = scalar_lea.vmem %s72_s25, 32 }
  0x37   :  { %p1507_p10 = scmp.ne.s32.totalorder %s72_s25, %s1506_s6  ;;  %p1511_p11 = scmp.lt.s32.totalorder %s72_s25, %s72_s25 }
  0x38   :  { %p1512_p12 = scmp.lt.s32.totalorder %s1510_s22, %s1506_s6 }
  0x3a   :  { %p1513_p13 = por %p1512_p12, %p1511_p11 }
  0x3c   :  { %p1514_p0 = pnand %p1513_p13, %p1507_p10 }
  0x3e   :  { %1517 = shalt.err (!%p1514_p0)
}
  0x3f   :  { %74 = dma.hbm_to_vmem [thread:$0]  %s1952_s8, 16, %s72_s25, [#allocation9]  }
  0x40   :  { %s1576_s29 = smov [#allocation11]   ;;  %s1518_s16 = scalar_lea.hbm %s1953_s9, 16 }
  0x41   :  { %s81_s30 = sshll.u32 %s1576_s29, 4  ;;  %p1519_p1 = scmp.ne.s32.totalorder %s1953_s9, %s1518_s16  ;;  %s82_s30 = int_to_ptr.vmem [resolvable:$true] %s81_s30 }
  0x42   :  { %p1522_p2 = scmp.lt.u32.totalorder %s1518_s16, %s1953_s9 }
  0x44   :  { %p1524_p3 = pnand %p1522_p2, %p1519_p1 }
  0x46   :  { %1527 = shalt.err (!%p1524_p3)
}
  0x47   :  { %s1528_s24 = scalar_lea.vmem %s82_s30, 16  ;;  %s1532_s8 = scalar_lea.vmem %s82_s30, 32 }
  0x48   :  { %p1529_p4 = scmp.ne.s32.totalorder %s82_s30, %s1528_s24  ;;  %p1533_p5 = scmp.lt.s32.totalorder %s82_s30, %s82_s30 }
  0x49   :  { %p1534_p6 = scmp.lt.s32.totalorder %s1532_s8, %s1528_s24 }
  0x4b   :  { %p1535_p7 = por %p1534_p6, %p1533_p5 }
  0x4d   :  { %p1536_p8 = pnand %p1535_p7, %p1529_p4 }
  0x4f   :  { %1539 = shalt.err (!%p1536_p8)
}
  0x50   :  { %84 = dma.hbm_to_vmem [thread:$0]  %s1953_s9, 16, %s82_s30, [#allocation12]  }
  0x51   :  { %1562 = dma.done.wait [#allocation6], 16  }
  0x52   :  { %1563 = vsyncadd [#allocation6], 4294967280 }
  0x53   :  { %1564 = dma.done.wait [#allocation4], 16  }
  0x54   :  { %1565 = vsyncadd [#allocation4], 4294967280 }
  0x55   :  { %1566 = dma.done.wait [#allocation9], 32  }
  0x56   :  { %1567 = vsyncadd [#allocation9], 4294967264 }
  0x57   :  { %1568 = dma.done.wait [#allocation12], 16  }
  0x58   :  { %1569 = vsyncadd [#allocation12], 4294967280 }
  0x59   :  { %110 = sfence }
  0x5a   :  { %v1384_v0 = vld [vmem:[%s1949_s5] sm:$0xff]   ;;  %v1577_v1 = vmov 0.0   ;;  %v1385_v2 = vld [vmem:[%s1949_s5 + $0x8] sm:$0xff]   ;;  %vm1578_vm0 = vmmov 0   ;;  %s114_s22 = sld [smem:[#allocation3]]  ;;  %vm163_vm1 = vcmask 261120  }
  0x5b   :  { %1241 = vmatprep.subr.bf16.mxu1 %v1577_v1  ;;  %1267 = vmatprep.subr.bf16.mxu0 %v1577_v1  ;;  %v1740_v3 = vld [vmem:[%s1944_s0] sm:$0xff]  ;;  %v1745_v4 = vld [vmem:[%s1944_s0 + $0x8] sm:$0xff]  ;;  %v1169_v10 = vld [vmem:[#allocation7] ss:$0 sm:$0xff]  ;;  %vm208_vm2 = vcmask 785408   ;;  %s1579_s0 = smov 120  }
  0x5c   :  { %1242 = vmatpush3.bf16.msra.mxu1 %v1384_v0  ;;  %1245 = vmatprep.mubr.msk.bf16.mxu1 %vm1578_vm0, %v1577_v1  ;;  %v1168_v8 = vld [vmem:[%s1947_s3] ss:$0 sm:$0xff]  ;;  %v1170_v17 = vld [vmem:[#allocation8] ss:$0 sm:$0xff]  ;;  %s1580_s3 = smov 96   ;;  %s1581_s2 = smov 80  }
  0x5d   :  { %1243 = vmatprep.subr.bf16.mxu1 %v1577_v1  ;;  %1269 = vmatprep.mubr.msk.bf16.mxu0 %vm1578_vm0, %v1577_v1  ;;  %s1582_s16 = smov 88   ;;  %s1583_s17 = smov 112   ;;  %vm228_vm3 = vcmask 64512   ;;  %v1782_v35 = vld [vmem:[%s1945_s1] sm:$0xff]  ;;  %v1787_v37 = vld [vmem:[%s1945_s1 + $0x8] sm:$0xff]  ;;  %vm276_vm4 = vcmask 130048  }
  0x5e   :  { %s1584_s1 = smov 64   ;;  %s1585_s8 = smov 72   ;;  %vm353_vm5 = vcmask 1043456  }
  0x5f   :  { %s1586_s25 = smov 104   ;;  %s1587_s26 = smov 48  }
  0x60   :  { %1244 = vmatpush3.bf16.msra.mxu1 %v1385_v2  ;;  %v117_v5 = vstv %s114_s22  ;;  %s1588_s9 = smov 56   ;;  %s1589_s4 = smov 40  }
  0x61   :  { %1249 = vmatprep.subr.bf16.mxu1 %v1577_v1  ;;  %v118_v6 = vmul.f32 %v117_v5, %v1740_v3  ;;  %v119_v7 = vmul.f32 %v117_v5, %v1745_v4  ;;  %s1590_s30 = smov [#allocation13]  }
  0x62   :  { %s1152_s5 = sshll.u32 %s1590_s30, 4  ;;  %s1153_s5 = int_to_ptr.vmem [resolvable:$true] %s1152_s5 }
  0x63   :  { %1396 = vtanh.f32 %v118_v6  ;;  %p1545_p10 = scmp.lt.s32.totalorder %s1153_s5, %s1153_s5 }
  0x64   :  { %1398 = vtanh.f32 %v119_v7 }
  0x6d   :  { %v1397_v9 = vpop.eup %1396 }
  0x6e   :  { %v1399_v11 = vpop.eup %1398  ;;  %v128_v12 = vmul.f32 %v1397_v9, %v1168_v8 }
  0x6f   :  { %v129_v13 = vmul.f32 %v1399_v11, %v1168_v8 }
  0x70   :  { %v137_v14 = vadd.f32 %v1169_v10, %v128_v12 }
  0x71   :  { %v138_v15 = vadd.f32 %v1169_v10, %v129_v13 }
  0x73   :  { %v139_v16 = vpack.c.bf16 %v138_v15, %v137_v14 }
  0x75   :  { %1246 = vmatmul.mubr.msk.bf16.vlgmr.msra.gmra.mrb[0].mxu1 %vm163_vm1, %v139_v16 }
  0x76   :  { %1251 = vmatprep.mubr.msk.bf16.mxu1 %vm1578_vm0, %v1577_v1 }
 0x148   :  { %v201_v18 = vpop.f32.mrb[0].mxu1 }
 0x149   :  { %v202_v19 = vadd.f32 %v1170_v17, %v201_v18  ;;  %v1247_v20 = vpop.f32.mrb[1].mxu1 }
 0x14a   :  { %v204_v21 = vpop.f32.mrb[2].mxu1 }
 0x14b   :  { %209 = vst.msk [vmem:[#allocation2] sm:$0xff] %vm208_vm2, %v202_v19  ;;  %v205_v22 = vadd.f32 %v1170_v17, %v204_v21  ;;  %v1248_v23 = vpop.f32.mrb[3].mxu1 }
 0x14d   :  { %210 = vst.msk [vmem:[#allocation2 + $0x8] sm:$0xff] %vm208_vm2, %v205_v22 }
 0x152   :  { %v222_v24 = vld [vmem:[#allocation2] sm:$0xff] }
 0x154   :  { %v223_v25 = vld [vmem:[#allocation2 + $0x8] sm:$0xff] }
 0x155   :  { %v1756_v26 = vpack.c.bf16 %v223_v25, %v222_v24 }
 0x157   :  { %400 = vrot.lane.b32.xlu1 %v1756_v26, %s1579_s0  ;;  %226 = vrot.lane.b32.xlu0 %v1756_v26, %s1580_s3 }
 0x15b   :  { %575 = vrot.lane.b32.xlu1 %v1756_v26, %s1581_s2  ;;  %402 = vrot.lane.b32.xlu0 %v1756_v26, %s1582_s16  ;;  %s1167_s2 = sld [smem:[#allocation3 + $0x1]] }
 0x15f   :  { %573 = vrot.lane.b32.xlu0 %v1756_v26, %s1583_s17 }
 0x1c9   :  { %v227_v27 = vpop.permute.xlu0 %226  ;;  %v401_v29 = vpop.permute.xlu1 %400 }
 0x1ca   :  { %v233_v28 = vsel %vm228_vm3, %v227_v27, 0 }
 0x1cb   :  { %1250 = vmatpush3.bf16.xpose.msra.mxu1 %v233_v28 }
 0x1cc   :  { %1255 = vmatprep.subr.bf16.mxu1 %v1577_v1 }
 0x1cd   :  { %v403_v30 = vpop.permute.xlu0 %402  ;;  %v576_v32 = vpop.permute.xlu1 %575 }
 0x1ce   :  { %v408_v31 = vsel %vm228_vm3, %v403_v30, 0  ;;  %v581_v33 = vsel %vm228_vm3, %v576_v32, 0 }
 0x1cf   :  { %1268 = vmatpush3.bf16.xpose.msra.mxu0 %v408_v31 }
 0x1d0   :  { %1285 = vmatprep.subr.bf16.mxu0 %v1577_v1 }
 0x1d1   :  { %v574_v34 = vpop.permute.xlu0 %573 }
 0x1d2   :  { %1252 = vmatmul.mubr.msk.bf16.vlgmr.msra.gmra.mrb[4].mxu1 %vm228_vm3, %v1756_v26 }
 0x1d3   :  { %1257 = vmatprep.mubr.msk.bf16.mxu1 %vm1578_vm0, %v1577_v1 }
 0x1d6   :  { %1270 = vmatmul.mubr.msk.bf16.vlgmr.msra.gmra.mrb[0].mxu0 %vm228_vm3, %v401_v29 }
 0x1d7   :  { %1286 = vmatpush3.bf16.xpose.msra.mxu0 %v581_v33  ;;  %1287 = vmatprep.mubr.msk.bf16.mxu0 %vm1578_vm0, %v1577_v1 }
 0x1d8   :  { %1291 = vmatprep.subr.bf16.mxu0 %v1577_v1 }
 0x1de   :  { %1288 = vmatmul.mubr.msk.bf16.vlgmr.msra.gmra.mrb[4].mxu0 %vm228_vm3, %v574_v34 }
 0x1df   :  { %1293 = vmatprep.mubr.msk.bf16.mxu0 %vm1578_vm0, %v1577_v1 }
 0x2a5   :  { %v269_v36 = vpop.f32.mrb[4].mxu1 }
 0x2a6   :  { %v270_v38 = vadd.f32 %v269_v36, %v1782_v35  ;;  %v1253_v39 = vpop.f32.mrb[5].mxu1 }
 0x2a7   :  { %v272_v40 = vpop.f32.mrb[6].mxu1 }
 0x2a8   :  { %v273_v41 = vadd.f32 %v272_v40, %v1787_v37  ;;  %v1254_v42 = vpop.f32.mrb[7].mxu1  ;;  %v277_v43 = vsel %vm276_vm4, %v270_v38, -inf }
 0x2a9   :  { %v444_v44 = vpop.f32.mrb[0].mxu0  ;;  %278 = vmax.xlane.f32.xlu1 %v277_v43 }
 0x2aa   :  { %v1271_v45 = vpop.f32.mrb[1].mxu0  ;;  %v280_v46 = vsel %vm276_vm4, %v273_v41, -inf  ;;  %v445_v18 = vadd.f32 %v444_v44, %v1782_v35 }
 0x2ab   :  { %v447_v47 = vpop.f32.mrb[2].mxu0  ;;  %281 = vmax.xlane.f32.xlu0 %v280_v46 }
 0x2ac   :  { %v1272_v48 = vpop.f32.mrb[3].mxu0  ;;  %v448_v16 = vadd.f32 %v447_v47, %v1787_v37  ;;  %v451_v19 = vsel %vm276_vm4, %v445_v18, -inf }
 0x2ae   :  { %v454_v17 = vsel %vm276_vm4, %v448_v16, -inf }
 0x2b1   :  { %v617_v49 = vpop.f32.mrb[4].mxu0 }
 0x2b2   :  { %v618_v50 = vadd.f32 %v617_v49, %v1782_v35  ;;  %v1289_v51 = vpop.f32.mrb[5].mxu0 }
 0x2b3   :  { %v620_v52 = vpop.f32.mrb[6].mxu0 }
 0x2b4   :  { %v621_v53 = vadd.f32 %v620_v52, %v1787_v37  ;;  %v1290_v54 = vpop.f32.mrb[7].mxu0  ;;  %v624_v55 = vsel %vm276_vm4, %v618_v50, -inf  ;;  %v347_v52 = vld [vmem:[%s1951_s7] sm:$0xff] }
 0x2b5   :  { %625 = vmax.xlane.f32.xlu0 %v624_v55 }
 0x2b6   :  { %v627_v56 = vsel %vm276_vm4, %v621_v53, -inf }
 0x2b7   :  { %628 = vmax.xlane.f32.xlu1 %v627_v56 }
 0x336   :  { %v279_v57 = vpop.xlane.xlu1 %278 }
 0x337   :  { %v283_v58 = vsub.f32 %v270_v38, %v279_v57 }
 0x338   :  { %v282_v59 = vpop.xlane.xlu0 %281 }
 0x339   :  { %v285_v60 = vmul.f32 1.442695, %v283_v58  ;;  %v284_v61 = vsub.f32 %v273_v41, %v282_v59 }
 0x33b   :  { %1400 = vpow2.f32 %v285_v60  ;;  %v287_v62 = vmul.f32 1.442695, %v284_v61 }
 0x33d   :  { %1402 = vpow2.f32 %v287_v62 }
 0x342   :  { %v626_v63 = vpop.xlane.xlu0 %625 }
 0x343   :  { %v630_v0 = vsub.f32 %v618_v50, %v626_v63 }
 0x344   :  { %v629_v2 = vpop.xlane.xlu1 %628 }
 0x345   :  { %v1401_v5 = vpop.eup %1400  ;;  %v632_v6 = vmul.f32 1.442695, %v630_v0  ;;  %v631_v7 = vsub.f32 %v621_v53, %v629_v2  ;;  %v348_v53 = vpack.c.bf16 %v347_v52, %v347_v52 }
 0x346   :  { %v289_v8 = vsel %vm276_vm4, %v1401_v5, 0.0 }
 0x347   :  { %v1403_v9 = vpop.eup %1402  ;;  %1404 = vpow2.f32 %v632_v6  ;;  %v634_v10 = vmul.f32 1.442695, %v631_v7  ;;  %290 = vadd.xlane.f32.xlu0 %v289_v8  ;;  %v355_v54 = vsel %vm353_vm5, %v348_v53, 0 }
 0x348   :  { %v292_v11 = vsel %vm276_vm4, %v1403_v9, 0.0 }
 0x349   :  { %1406 = vpow2.f32 %v634_v10  ;;  %293 = vadd.xlane.f32.xlu1 %v292_v11 }
 0x351   :  { %v1405_v12 = vpop.eup %1404 }
 0x352   :  { %v636_v13 = vsel %vm276_vm4, %v1405_v12, 0.0 }
 0x353   :  { %v1407_v14 = vpop.eup %1406  ;;  %637 = vadd.xlane.f32.xlu1 %v636_v13 }
 0x354   :  { %v639_v15 = vsel %vm276_vm4, %v1407_v14, 0.0 }
 0x357   :  { %640 = vadd.xlane.f32.xlu1 %v639_v15 }
 0x35d   :  { %300 = vrot.lane.b32.xlu0 %v1756_v26, %s1584_s1 }
 0x361   :  { %748 = vrot.lane.b32.xlu0 %v1756_v26, %s1585_s8 }
 0x365   :  { %746 = vrot.lane.b32.xlu0 %v1756_v26, %s1586_s25 }
 0x368   :  { %647 = vrot.lane.b32.xlu1 %v1756_v26, %s1587_s26 }
 0x384   :  { %455 = vmax.xlane.f32.xlu0 %v454_v17 }
 0x38c   :  { %452 = vmax.xlane.f32.xlu1 %v451_v19 }
 0x3d4   :  { %v291_v20 = vpop.xlane.xlu0 %290 }
 0x3d5   :  { %1408 = vrcp.f32 %v291_v20  ;;  %v521_v20 = vld [vmem:[%s1951_s7 + $0x8] sm:$0xff] }
 0x3d6   :  { %v294_v21 = vpop.xlane.xlu1 %293 }
 0x3d7   :  { %1410 = vrcp.f32 %v294_v21  ;;  %v522_v21 = vpack.c.bf16 %v521_v20, %v521_v20  ;;  %v1391_v20 = vld [vmem:[%s1957_s13 + $0x18] sm:$0xff]  }
 0x3d8   :  { %v301_v22 = vpop.permute.xlu0 %300 }
 0x3d9   :  { %1256 = vmatpush3.bf16.msra.mxu1 %v301_v22  ;;  %v528_v22 = vsel %vm353_vm5, %v522_v21, 0  ;;  %v1392_v21 = vld [vmem:[%s1957_s13 + $0x20] sm:$0xff]  }
 0x3da   :  { %1261 = vmatprep.subr.bf16.mxu1 %v1577_v1 }
 0x3dc   :  { %v749_v38 = vpop.permute.xlu0 %748 }
 0x3dd   :  { %v754_v40 = vsel %vm228_vm3, %v749_v38, 0 }
 0x3df   :  { %v1409_v23 = vpop.eup %1408 }
 0x3e0   :  { %v638_v24 = vpop.xlane.xlu1 %637  ;;  %v297_v27 = vmul.f32 %v1409_v23, %v1401_v5  ;;  %v747_v41 = vpop.permute.xlu0 %746 }
 0x3e1   :  { %v1411_v25 = vpop.eup %1410  ;;  %1412 = vrcp.f32 %v638_v24 }
 0x3e2   :  { %v298_v28 = vmul.f32 %v1411_v25, %v1403_v9 }
 0x3e4   :  { %v641_v29 = vpop.xlane.xlu1 %640  ;;  %v299_v30 = vpack.c.bf16 %v298_v28, %v297_v27 }
 0x3e5   :  { %1414 = vrcp.f32 %v641_v29 }
 0x3e6   :  { %1258 = vmatmul.mubr.msk.bf16.vlgmr.msra.gmra.mrb[8].mxu1 %vm276_vm4, %v299_v30 }
 0x3e7   :  { %1263 = vmatprep.mubr.msk.bf16.mxu1 %vm1578_vm0, %v1577_v1  ;;  %1262 = vmatpush3.bf16.msra.mxu1 %v355_v54 }
 0x3e8   :  { %v648_v31 = vpop.permute.xlu1 %647  ;;  %1273 = vmatprep.subr.bf16.mxu1 %v1577_v1 }
 0x3e9   :  { %1292 = vmatpush3.bf16.msra.mxu0 %v648_v31 }
 0x3ea   :  { %1303 = vmatprep.subr.bf16.mxu0 %v1577_v1 }
 0x3eb   :  { %v1413_v32 = vpop.eup %1412 }
 0x3ec   :  { %v644_v34 = vmul.f32 %v1413_v32, %v1405_v12  ;;  %v694_v32 = vld [vmem:[%s1951_s7 + $0x10] sm:$0xff] }
 0x3ef   :  { %v1415_v33 = vpop.eup %1414 }
 0x3f0   :  { %v645_v36 = vmul.f32 %v1415_v33, %v1407_v14  ;;  %v695_v33 = vpack.c.bf16 %v694_v32, %v694_v32 }
 0x3f2   :  { %v646_v39 = vpack.c.bf16 %v645_v36, %v644_v34 }
 0x3f4   :  { %1294 = vmatmul.mubr.msk.bf16.vlgmr.msra.gmra.mrb[8].mxu0 %vm276_vm4, %v646_v39 }
 0x3f5   :  { %1304 = vmatpush3.bf16.xpose.msra.mxu0 %v754_v40  ;;  %1305 = vmatprep.mubr.msk.bf16.mxu0 %vm1578_vm0, %v1577_v1 }
 0x3f6   :  { %1321 = vmatprep.subr.bf16.mxu0 %v1577_v1 }
 0x3fc   :  { %1306 = vmatmul.mubr.msk.bf16.vlgmr.msra.gmra.mrb[12].mxu0 %vm228_vm3, %v747_v41  ;;  %v701_v41 = vsel %vm353_vm5, %v695_v33, 0 }
 0x3fd   :  { %1325 = vmatprep.mubr.msk.bf16.mxu0 %vm1578_vm0, %v1577_v1 }
 0x411   :  { %v456_v42 = vpop.xlane.xlu0 %455 }
 0x412   :  { %v458_v43 = vsub.f32 %v448_v16, %v456_v42 }
 0x414   :  { %v461_v44 = vmul.f32 1.442695, %v458_v43 }
 0x416   :  { %1416 = vpow2.f32 %v461_v44  ;;  %v867_v44 = vld [vmem:[%s1951_s7 + $0x18] sm:$0xff]  ;;  %s1540_s7 = scalar_lea.vmem %s1153_s5, 256 }
 0x417   :  { %p1541_p9 = scmp.ne.s32.totalorder %s1153_s5, %s1540_s7  ;;  %p1546_p11 = scmp.lt.s32.totalorder %s1540_s7, %s1540_s7 }
 0x419   :  { %v453_v45 = vpop.xlane.xlu1 %452  ;;  %p1547_p12 = por %p1546_p11, %p1545_p10 }
 0x41a   :  { %v457_v46 = vsub.f32 %v445_v18, %v453_v45 }
 0x41b   :  { %p1548_p13 = pnand %p1547_p12, %p1541_p9 }
 0x41c   :  { %v459_v47 = vmul.f32 1.442695, %v457_v46  ;;  %v868_v46 = vpack.c.bf16 %v867_v44, %v867_v44 }
 0x41e   :  { %1418 = vpow2.f32 %v459_v47 }
 0x420   :  { %v1417_v48 = vpop.eup %1416 }
 0x421   :  { %v466_v49 = vsel %vm276_vm4, %v1417_v48, 0.0 }
 0x422   :  { %467 = vadd.xlane.f32.xlu1 %v466_v49 }
 0x428   :  { %v1419_v50 = vpop.eup %1418 }
 0x429   :  { %v463_v51 = vsel %vm276_vm4, %v1419_v50, 0.0 }
 0x42a   :  { %464 = vadd.xlane.f32.xlu0 %v463_v51  ;;  %v874_v51 = vsel %vm353_vm5, %v868_v46, 0 }
 0x440   :  { %474 = vrot.lane.b32.xlu0 %v1756_v26, %s1588_s9 }
 0x4af   :  { %v468_v55 = vpop.xlane.xlu1 %467 }
 0x4b0   :  { %1420 = vrcp.f32 %v468_v55 }
 0x4b7   :  { %v465_v56 = vpop.xlane.xlu0 %464 }
 0x4b8   :  { %1422 = vrcp.f32 %v465_v56 }
 0x4b9   :  { %v340_v57 = vpop.f32.mrb[8].mxu1 }
 0x4ba   :  { %v1259_v58 = vpop.f32.mrb[9].mxu1  ;;  %v1421_v63 = vpop.eup %1420 }
 0x4bb   :  { %v343_v59 = vpop.f32.mrb[10].mxu1  ;;  %v475_v62 = vpop.permute.xlu0 %474  ;;  %v472_v2 = vmul.f32 %v1421_v63, %v1417_v48  ;;  %v1387_v58 = vld [vmem:[%s1955_s11 + $0x8] sm:$0xff]   ;;  %v920_v63 = vstv %s1167_s2 }
 0x4bc   :  { %v349_v60 = vpack.c.bf16 %v343_v59, %v340_v57  ;;  %v1260_v61 = vpop.f32.mrb[11].mxu1  ;;  %v1386_v57 = vld [vmem:[%s1955_s11] sm:$0xff]   ;;  %v1174_v59 = vld [vmem:[#allocation10] ss:$0 sm:$0xff] }
 0x4bd   :  { %1322 = vmatpush3.bf16.msra.mxu0 %v1386_v57  ;;  %v221_v61 = vadd.f32 %v1174_v59, %v1745_v4  ;;  %v1188_v4 = vld [vmem:[%s1954_s10] ss:$0 sm:$0xff] }
 0x4be   :  { %1264 = vmatmul.mubr.msk.bf16.vlgmr.msra.gmra.mrb[12].mxu1 %vm228_vm3, %v349_v60  ;;  %1323 = vmatprep.subr.bf16.mxu0 %v1577_v1  ;;  %v220_v60 = vadd.f32 %v1174_v59, %v1740_v3 }
 0x4bf   :  { %1274 = vmatpush3.bf16.msra.mxu1 %v475_v62  ;;  %1275 = vmatprep.mubr.msk.bf16.mxu1 %vm1578_vm0, %v1577_v1 }
 0x4c0   :  { %1279 = vmatprep.subr.bf16.mxu1 %v1577_v1 }
 0x4c1   :  { %1324 = vmatpush3.bf16.msra.mxu0 %v1387_v58 }
 0x4c2   :  { %v1423_v0 = vpop.eup %1422  ;;  %1329 = vmatprep.subr.bf16.mxu0 %v1577_v1 }
 0x4c3   :  { %v471_v5 = vmul.f32 %v1423_v0, %v1419_v50 }
 0x4c5   :  { %v473_v6 = vpack.c.bf16 %v472_v2, %v471_v5 }
 0x4c7   :  { %1276 = vmatmul.mubr.msk.bf16.vlgmr.msra.gmra.mrb[16].mxu1 %vm276_vm4, %v473_v6  ;;  %v687_v7 = vpop.f32.mrb[8].mxu0 }
 0x4c8   :  { %v1295_v8 = vpop.f32.mrb[9].mxu0  ;;  %1281 = vmatprep.mubr.msk.bf16.mxu1 %vm1578_vm0, %v1577_v1  ;;  %1280 = vmatpush3.bf16.msra.mxu1 %v528_v22  ;;  %v1393_v22 = vld [vmem:[%s1957_s13 + $0x28] sm:$0xff]  }
 0x4c9   :  { %v690_v9 = vpop.f32.mrb[10].mxu0  ;;  %1297 = vmatprep.subr.bf16.mxu1 %v1577_v1 }
 0x4ca   :  { %v696_v10 = vpack.c.bf16 %v690_v9, %v687_v7  ;;  %v1296_v11 = vpop.f32.mrb[11].mxu0 }
 0x4cf   :  { %v790_v12 = vpop.f32.mrb[12].mxu0 }
 0x4d0   :  { %v791_v13 = vadd.f32 %v790_v12, %v1782_v35  ;;  %v1307_v14 = vpop.f32.mrb[13].mxu0 }
 0x4d1   :  { %v793_v15 = vpop.f32.mrb[14].mxu0 }
 0x4d2   :  { %v794_v16 = vadd.f32 %v793_v15, %v1787_v37  ;;  %v1308_v17 = vpop.f32.mrb[15].mxu0  ;;  %v797_v18 = vsel %vm276_vm4, %v791_v13, -inf }
 0x4d3   :  { %798 = vmax.xlane.f32.xlu1 %v797_v18  ;;  %v1388_v17 = vld [vmem:[%s1957_s13] sm:$0xff]   ;;  %v1389_v18 = vld [vmem:[%s1957_s13 + $0x8] sm:$0xff]  }
 0x4d4   :  { %v800_v19 = vsel %vm276_vm4, %v794_v16, -inf }
 0x4d7   :  { %801 = vmax.xlane.f32.xlu1 %v800_v19  ;;  %v1390_v19 = vld [vmem:[%s1957_s13 + $0x10] sm:$0xff]  }
 0x560   :  { %v799_v35 = vpop.xlane.xlu1 %798 }
 0x561   :  { %v803_v23 = vsub.f32 %v791_v13, %v799_v35  ;;  %v1394_v35 = vld [vmem:[%s1957_s13 + $0x30] sm:$0xff]  }
 0x563   :  { %v805_v37 = vmul.f32 1.442695, %v803_v23  ;;  %v1395_v23 = vld [vmem:[%s1957_s13 + $0x38] sm:$0xff]  }
 0x564   :  { %v802_v24 = vpop.xlane.xlu1 %801 }
 0x565   :  { %1424 = vpow2.f32 %v805_v37  ;;  %v804_v25 = vsub.f32 %v794_v16, %v802_v24  ;;  %v1189_v37 = vld [vmem:[%s1956_s12] ss:$0 sm:$0xff] }
 0x567   :  { %v807_v27 = vmul.f32 1.442695, %v804_v25 }
 0x569   :  { %1426 = vpow2.f32 %v807_v27 }
 0x56f   :  { %v1425_v28 = vpop.eup %1424 }
 0x570   :  { %v809_v29 = vsel %vm276_vm4, %v1425_v28, 0.0 }
 0x571   :  { %810 = vadd.xlane.f32.xlu1 %v809_v29 }
 0x573   :  { %v1427_v30 = vpop.eup %1426 }
 0x574   :  { %v812_v31 = vsel %vm276_vm4, %v1427_v30, 0.0 }
 0x575   :  { %813 = vadd.xlane.f32.xlu1 %v812_v31 }
 0x586   :  { %820 = vrot.lane.b32.xlu1 %v1756_v26, %s1589_s4 }
 0x59a   :  { %v514_v34 = vpop.f32.mrb[16].mxu1 }
 0x59b   :  { %v1277_v36 = vpop.f32.mrb[17].mxu1 }
 0x59c   :  { %v517_v38 = vpop.f32.mrb[18].mxu1 }
 0x59d   :  { %v523_v39 = vpack.c.bf16 %v517_v38, %v514_v34  ;;  %v1278_v40 = vpop.f32.mrb[19].mxu1 }
 0x59f   :  { %1282 = vmatmul.mubr.msk.bf16.vlgmr.msra.gmra.mrb[12].mxu1 %vm228_vm3, %v523_v39 }
 0x5a0   :  { %1298 = vmatpush3.bf16.msra.mxu1 %v701_v41  ;;  %1299 = vmatprep.mubr.msk.bf16.mxu1 %vm1578_vm0, %v1577_v1 }
 0x5a1   :  { %1309 = vmatprep.subr.bf16.mxu1 %v1577_v1 }
 0x5ab   :  { %1300 = vmatmul.mubr.msk.bf16.vlgmr.msra.gmra.mrb[12].mxu1 %vm228_vm3, %v696_v10  ;;  %v1187_v10 = vld [vmem:[#allocation11] ss:$0 sm:$0xff] }
 0x5ac   :  { %1311 = vmatprep.mubr.msk.bf16.mxu1 %vm1578_vm0, %v1577_v1 }
 0x5fe   :  { %v811_v26 = vpop.xlane.xlu1 %810 }
 0x5ff   :  { %1428 = vrcp.f32 %v811_v26 }
 0x602   :  { %v814_v42 = vpop.xlane.xlu1 %813 }
 0x603   :  { %1430 = vrcp.f32 %v814_v42 }
 0x606   :  { %v821_v43 = vpop.permute.xlu1 %820 }
 0x607   :  { %1310 = vmatpush3.bf16.msra.mxu1 %v821_v43 }
 0x608   :  { %1315 = vmatprep.subr.bf16.mxu1 %v1577_v1 }
 0x609   :  { %v1429_v45 = vpop.eup %1428 }
 0x60a   :  { %v817_v48 = vmul.f32 %v1429_v45, %v1425_v28 }
 0x60d   :  { %v1431_v47 = vpop.eup %1430 }
 0x60e   :  { %v818_v49 = vmul.f32 %v1431_v47, %v1427_v30 }
 0x610   :  { %v819_v50 = vpack.c.bf16 %v818_v49, %v817_v48 }
 0x612   :  { %1312 = vmatmul.mubr.msk.bf16.vlgmr.msra.gmra.mrb[20].mxu1 %vm276_vm4, %v819_v50 }
 0x613   :  { %1316 = vmatpush3.bf16.msra.mxu1 %v874_v51  ;;  %1317 = vmatprep.mubr.msk.bf16.mxu1 %vm1578_vm0, %v1577_v1  ;;  %v1201_v51 = vld [vmem:[%s1958_s14] ss:$0 sm:$0xff] }
 0x6e5   :  { %v860_v52 = vpop.f32.mrb[20].mxu1 }
 0x6e6   :  { %v1313_v53 = vpop.f32.mrb[21].mxu1 }
 0x6e7   :  { %v863_v54 = vpop.f32.mrb[22].mxu1 }
 0x6e8   :  { %v869_v55 = vpack.c.bf16 %v863_v54, %v860_v52  ;;  %v1314_v56 = vpop.f32.mrb[23].mxu1 }
 0x6ea   :  { %1318 = vmatmul.mubr.msk.bf16.vlgmr.msra.gmra.mrb[12].mxu1 %vm228_vm3, %v869_v55 }
 0x7bd   :  { %v910_v62 = vpop.f32.mrb[12].mxu1 }
 0x7be   :  { %v1879_v0 = vadd.f32 %v910_v62, %v220_v60  ;;  %v1319_v2 = vpop.f32.mrb[13].mxu1 }
 0x7bf   :  { %v913_v5 = vpop.f32.mrb[14].mxu1 }
 0x7c0   :  { %v921_v6 = vmul.f32 %v1879_v0, %v920_v63  ;;  %v1882_v7 = vadd.f32 %v913_v5, %v221_v61  ;;  %v1320_v8 = vpop.f32.mrb[15].mxu1 }
 0x7c2   :  { %1432 = vtanh.f32 %v921_v6  ;;  %v922_v9 = vmul.f32 %v1882_v7, %v920_v63 }
 0x7c4   :  { %1434 = vtanh.f32 %v922_v9 }
 0x7cc   :  { %v1433_v11 = vpop.eup %1432 }
 0x7cd   :  { %v931_v3 = vmul.f32 %v1433_v11, %v1187_v10 }
 0x7ce   :  { %v1435_v12 = vpop.eup %1434 }
 0x7cf   :  { %v932_v13 = vmul.f32 %v1435_v12, %v1187_v10  ;;  %v940_v14 = vadd.f32 %v1188_v4, %v931_v3 }
 0x7d1   :  { %v941_v15 = vadd.f32 %v1188_v4, %v932_v13 }
 0x7d3   :  { %v942_v16 = vpack.c.bf16 %v941_v15, %v940_v14 }
 0x7d5   :  { %1326 = vmatmul.mubr.msk.bf16.vlgmr.msra.gmra.mrb[16].mxu0 %vm163_vm1, %v942_v16 }
 0x7d6   :  { %1345 = vmatprep.mubr.msk.bf16.mxu0 %vm1578_vm0, %v1577_v1  ;;  %1330 = vmatpush3.bf16.msra.mxu0 %v1388_v17 }
 0x7d7   :  { %1331 = vmatprep.subr.bf16.mxu0 %v1577_v1 }
 0x7da   :  { %1332 = vmatpush3.bf16.msra.mxu0 %v1389_v18 }
 0x7db   :  { %1333 = vmatprep.subr.bf16.mxu0 %v1577_v1 }
 0x7de   :  { %1334 = vmatpush3.bf16.msra.mxu0 %v1390_v19 }
 0x7df   :  { %1335 = vmatprep.subr.bf16.mxu0 %v1577_v1 }
 0x7e2   :  { %1336 = vmatpush3.bf16.msra.mxu0 %v1391_v20 }
 0x7e3   :  { %1337 = vmatprep.subr.bf16.mxu0 %v1577_v1 }
 0x7e6   :  { %1338 = vmatpush3.bf16.msra.mxu0 %v1392_v21 }
 0x7e7   :  { %1339 = vmatprep.subr.bf16.mxu0 %v1577_v1 }
 0x7ea   :  { %1340 = vmatpush3.bf16.msra.mxu0 %v1393_v22 }
 0x7eb   :  { %1341 = vmatprep.subr.bf16.mxu0 %v1577_v1 }
 0x7ee   :  { %1342 = vmatpush3.bf16.msra.mxu0 %v1394_v35 }
 0x7ef   :  { %1343 = vmatprep.subr.bf16.mxu0 %v1577_v1 }
 0x7f2   :  { %1344 = vmatpush3.bf16.msra.mxu0 %v1395_v23 }
 0x8a8   :  { %v1003_v24 = vpop.f32.mrb[16].mxu0 }
 0x8a9   :  { %v1004_v25 = vadd.f32 %v1189_v37, %v1003_v24  ;;  %v1327_v27 = vpop.f32.mrb[17].mxu0 }
 0x8aa   :  { %v1006_v28 = vpop.f32.mrb[18].mxu0 }
 0x8ab   :  { %v1010_v29 = vmul.f32 %v1004_v25, %v1004_v25  ;;  %v1007_v30 = vadd.f32 %v1189_v37, %v1006_v28  ;;  %v1328_v31 = vpop.f32.mrb[19].mxu0 }
 0x8ad   :  { %v1012_v32 = vmul.f32 %v1010_v29, %v1004_v25  ;;  %v1011_v33 = vmul.f32 %v1007_v30, %v1007_v30 }
 0x8af   :  { %v1014_v34 = vmul.f32 0.044715, %v1012_v32  ;;  %v1013_v1 = vmul.f32 %v1011_v33, %v1007_v30 }
 0x8b1   :  { %v1016_v36 = vadd.f32 %v1014_v34, %v1004_v25  ;;  %v1015_v38 = vmul.f32 0.044715, %v1013_v1 }
 0x8b3   :  { %v1018_v39 = vmul.f32 0.7978846, %v1016_v36  ;;  %v1017_v40 = vadd.f32 %v1015_v38, %v1007_v30 }
 0x8b5   :  { %1436 = vtanh.f32 %v1018_v39  ;;  %v1019_v41 = vmul.f32 0.7978846, %v1017_v40 }
 0x8b7   :  { %1438 = vtanh.f32 %v1019_v41 }
 0x8bf   :  { %v1437_v26 = vpop.eup %1436 }
 0x8c0   :  { %v1022_v42 = vadd.f32 1.0, %v1437_v26 }
 0x8c1   :  { %v1439_v43 = vpop.eup %1438 }
 0x8c2   :  { %v1024_v44 = vmul.f32 0.5, %v1022_v42  ;;  %v1023_v45 = vadd.f32 1.0, %v1439_v43 }
 0x8c4   :  { %v1025_v46 = vmul.f32 0.5, %v1023_v45  ;;  %v1026_v47 = vmul.f32 %v1024_v44, %v1004_v25 }
 0x8c6   :  { %v1027_v48 = vmul.f32 %v1025_v46, %v1007_v30 }
 0x8c8   :  { %v1028_v49 = vpack.c.bf16 %v1027_v48, %v1026_v47 }
 0x8ca   :  { %1346 = vmatmul.mubr.bf16.vlgmr.msra.gmra.mrb[20].mxu0 %v1028_v49 }
 0x99d   :  { %v1127_v50 = vpop.f32.mrb[20].mxu0 }
 0x99e   :  { %v1134_v52 = vadd.f32 %v1879_v0, %v1127_v50  ;;  %v1347_v53 = vpop.f32.mrb[21].mxu0 }
 0x99f   :  { %v1130_v54 = vpop.f32.mrb[22].mxu0 }
 0x9a0   :  { %v1143_v55 = vadd.f32 %v1201_v51, %v1134_v52  ;;  %v1135_v56 = vadd.f32 %v1882_v7, %v1130_v54  ;;  %v1348_v57 = vpop.f32.mrb[23].mxu0 }
 0x9a2   :  { %1145 = vst.msk [vmem:[#allocation13] sm:$0xff] %vm163_vm1, %v1143_v55  ;;  %v1144_v58 = vadd.f32 %v1201_v51, %v1135_v56 }
 0x9a4   :  { %1146 = vst.msk [vmem:[#allocation13 + $0x8] sm:$0xff] %vm163_vm1, %v1144_v58 }
 0x9a5   :  { %1551 = shalt.err (!%p1548_p13)
}
 0x9a6   :  { %s1552_s0 = scalar_lea.hbm %s1959_s15, 256 }
 0x9a7   :  { %p1553_p0 = scmp.ne.s32.totalorder %s1959_s15, %s1552_s0  ;;  %p1556_p1 = scmp.lt.u32.totalorder %s1552_s0, %s1959_s15 }
 0x9a9   :  { %p1558_p2 = pnand %p1556_p1, %p1553_p0 }
 0x9ab   :  { %1561 = shalt.err (!%p1558_p2)
}
 0x9ac   :  { %s1591_s17 = smov 128   ;;  %s1592_s18 = smov 8  }
 0x9ad   :  { %1158 = dma.vmem_to_hbm [thread:$0]  %s1153_s5, 256, %s1959_s15, [#allocation5], %s1591_s17, %s1591_s17, %s1592_s18  }
 0x9ae   :  { %1570 = dma.done.wait [#allocation5], 256  }
 0x9af   :  { %1571 = vsyncadd [#allocation5], 4294967040 }
 0x9b0   :  { %1162 = vsyncpa [#allocation4], 1 }
 0x9b1   :  { %1163 = vsyncpa [#allocation9], 1 }
 0x9b2   :  { %1164 = vsyncpa [#allocation12], 1 }
 0x9b3   :  { %1165 = vsyncpa [#allocation5], 1 }
 0x9b4   :  { %1166 = vsyncpa [#allocation6], 1 }

</bundles_post_ra>
